<compile_context>
chip_gen: v7x
topology: tpu7x:2x2x1
jax: 0.10.0
libtpu: 0.0.40
codegen_flags: <defaults>
</compile_context>

<pallas_src>
import jax
import jax.numpy as jnp
from jax.experimental import pallas as pl
from jax.experimental.pallas import tpu as pltpu


def _make_fusion_kernel(n_models):
    """Builds kernel: out = (sum_k x_k @ w_k) + b_sum, f32 accumulation."""

    def kernel(*refs):
        x_refs = refs[:n_models]
        w_refs = refs[n_models:2 * n_models]
        b_ref = refs[2 * n_models]
        o_ref = refs[2 * n_models + 1]

        acc = jnp.dot(x_refs[0][...], w_refs[0][...],
                      preferred_element_type=jnp.float32)
        for x_r, w_r in zip(x_refs[1:], w_refs[1:]):
            acc = acc + jnp.dot(x_r[...], w_r[...],
                                preferred_element_type=jnp.float32)
        o_ref[...] = (acc + b_ref[...]).astype(o_ref.dtype)

    return kernel


def fusion_forward(xs, ws, bs, *, block_b=2048, compute_dtype=None,
                   force_streaming=False, gridless_vmem_budget=24 << 20):
    """Fused forward of FusionModel with Linear sub-models.

    xs: list of (B, F_k) inputs
    ws: list of (F_k, H) weights (already transposed from PyTorch's (H, F_k))
    bs: list of (H,) biases
    returns: (B, H) == sum_k (x_k @ W_k + b_k)
    """
    n = len(xs)
    assert len(ws) == n and len(bs) == n
    B = xs[0].shape[0]
    H = ws[0].shape[1]
    out_dtype = xs[0].dtype

    # Bias pre-sum: the only remaining param glue (tiny; folds to a constant
    # under jit with fixed weights -- no per-call W concat anymore).
    b_sum = sum(bs).reshape(1, H).astype(jnp.float32)

    if compute_dtype is not None:
        # Mem-bound kernel: bf16 inputs/weights halve HBM traffic; accumulation
        # stays f32 inside the kernel, output keeps the original dtype.
        xs = [x.astype(compute_dtype) for x in xs]
        ws = [w.astype(compute_dtype) for w in ws]

    kernel = _make_fusion_kernel(n)

    # Whole-problem VMEM footprint (inputs + resident weights + bias + f32
    # accumulator + output) for the grid-less path decision.
    nbytes = lambda a: a.size * a.dtype.itemsize
    total_bytes = (sum(nbytes(x) for x in xs) + sum(nbytes(w) for w in ws)
                   + nbytes(b_sum) + 2 * B * H * 4)

    if not force_streaming and total_bytes <= gridless_vmem_budget:
        # Grid-less path: everything VMEM-resident, one kernel invocation,
        # n+n+1 input DMAs + 1 output DMA total.  No per-step grid overhead,
        # no double-buffering of tiny operands.
        vmem = pl.BlockSpec(memory_space=pltpu.MemorySpace.VMEM)
        return pl.pallas_call(
            kernel,
            out_shape=jax.ShapeDtypeStruct((B, H), out_dtype),
            in_specs=[vmem] * (2 * n + 1),
            out_specs=vmem,
            compiler_params=pltpu.CompilerParams(vmem_limit_bytes=48 << 20),
        )(*xs, *ws, b_sum)

    # Streaming path for large B: block over the batch axis (double-buffered
    # by BlockSpec), weights/bias stay VMEM-resident via index_map -> (0, 0).
    # "parallel" lets megacore (v7x: 2 TCs) shard the batch-tile loop.
    block_b = min(block_b, B)
    nb = pl.cdiv(B, block_b)
    x_specs = [pl.BlockSpec((block_b, x.shape[1]), lambda i: (i, 0)) for x in xs]
    w_specs = [pl.BlockSpec(w.shape, lambda i: (0, 0)) for w in ws]
    b_spec = pl.BlockSpec((1, H), lambda i: (0, 0))
    return pl.pallas_call(
        kernel,
        out_shape=jax.ShapeDtypeStruct((B, H), out_dtype),
        grid=(nb,),
        in_specs=x_specs + w_specs + [b_spec],
        out_specs=pl.BlockSpec((block_b, H), lambda i: (i, 0)),
        compiler_params=pltpu.CompilerParams(
            dimension_semantics=("parallel",)),
    )(*xs, *ws, b_sum)


if __name__ == "__main__":
    key = jax.random.PRNGKey(0)
    F_dims = [32, 48, 64]      # per-sub-model input feature dims
    H = 32                     # common output (hidden) dim

    keys = jax.random.split(key, 2 * len(F_dims) + 1)
    ws, bs = [], []
    for k, Fk in enumerate(F_dims):
        # deterministic "Linear" params (W stored already transposed: (F_k, H))
        ws.append(jax.random.normal(keys[2 * k], (Fk, H), dtype=jnp.float32)
                  * (1.0 / jnp.sqrt(Fk)))
        bs.append(jnp.linspace(-0.5, 0.5, H, dtype=jnp.float32) * (k + 1))

    def ref_forward(xs_):
        return sum(x @ w + b for x, w, b in zip(xs_, ws, bs))

    # ---- small batch: grid-less, whole-arrays-in-VMEM path ----
    B = 8
    xs = [jax.random.normal(keys[2 * k + 1], (B, Fk), dtype=jnp.float32)
          for k, Fk in enumerate(F_dims)]
    out = jax.block_until_ready(fusion_forward(xs, ws, bs))
    assert out.shape == (B, H)
    assert jnp.allclose(out, ref_forward(xs), atol=1e-4, rtol=1e-4)

    # ---- streaming (batch-tiled, megacore-parallel) path, f32 ----
    # force_streaming exercises the grid path; block_b=1024 gives 4 grid steps
    # so each v7x TensorCore still gets >=2 pipelined iterations.
    B_big = 4096
    kb = jax.random.split(jax.random.PRNGKey(1), len(F_dims))
    xs_big = [jax.random.normal(kb[k], (B_big, Fk), dtype=jnp.float32)
              for k, Fk in enumerate(F_dims)]
    out_big = jax.block_until_ready(
        fusion_forward(xs_big, ws, bs, block_b=1024, force_streaming=True))
    assert out_big.shape == (B_big, H)
    assert jnp.allclose(out_big, ref_forward(xs_big), atol=1e-3, rtol=1e-3)

    # ---- streaming path with bf16 inputs (halved HBM bytes), f32 accum ----
    out_bf16 = jax.block_until_ready(
        fusion_forward(xs_big, ws, bs, block_b=1024, force_streaming=True,
                       compute_dtype=jnp.bfloat16))
    assert out_bf16.shape == (B_big, H)
    assert jnp.allclose(out_bf16, ref_forward(xs_big), atol=5e-2, rtol=5e-2)

    print("KERNEL_OK")
</pallas_src>

<mosaic_0001>
module attributes {stable_mosaic.version = 11 : i64} {
  func.func @kernel(%arg0: memref<8x32xf32, #tpu.memory_space<vmem>>, %arg1: memref<8x48xf32, #tpu.memory_space<vmem>>, %arg2: memref<8x64xf32, #tpu.memory_space<vmem>>, %arg3: memref<32x32xf32, #tpu.memory_space<vmem>>, %arg4: memref<48x32xf32, #tpu.memory_space<vmem>>, %arg5: memref<64x32xf32, #tpu.memory_space<vmem>>, %arg6: memref<1x32xf32, #tpu.memory_space<vmem>>, %arg7: memref<8x32xf32, #tpu.memory_space<vmem>>) attributes {dimension_semantics = [], scalar_prefetch = 0 : i64, scratch_operands = 0 : i64, tpu.core_type = #tpu.core_type<tc>} {
    %c0 = arith.constant 0 : index
    %c0_0 = arith.constant 0 : index
    %0 = vector.load %arg0[%c0, %c0_0] : memref<8x32xf32, #tpu.memory_space<vmem>>, vector<8x32xf32>
    %c0_1 = arith.constant 0 : index
    %c0_2 = arith.constant 0 : index
    %1 = vector.load %arg3[%c0_1, %c0_2] : memref<32x32xf32, #tpu.memory_space<vmem>>, vector<32x32xf32>
    %cst = arith.constant dense<0.000000e+00> : vector<8x32xf32>
    %2 = tpu.matmul %0, %1, %cst {dimension_numbers = #tpu.dot_dimension_numbers<[1], [0], [0], [1], [0, 0, 1, 1], [], []>} : vector<8x32xf32>, vector<32x32xf32>, vector<8x32xf32> -> vector<8x32xf32>
    %c0_3 = arith.constant 0 : index
    %c0_4 = arith.constant 0 : index
    %3 = vector.load %arg1[%c0_3, %c0_4] : memref<8x48xf32, #tpu.memory_space<vmem>>, vector<8x48xf32>
    %c0_5 = arith.constant 0 : index
    %c0_6 = arith.constant 0 : index
    %4 = vector.load %arg4[%c0_5, %c0_6] : memref<48x32xf32, #tpu.memory_space<vmem>>, vector<48x32xf32>
    %cst_7 = arith.constant dense<0.000000e+00> : vector<8x32xf32>
    %5 = tpu.matmul %3, %4, %cst_7 {dimension_numbers = #tpu.dot_dimension_numbers<[1], [0], [0], [1], [0, 0, 1, 1], [], []>} : vector<8x48xf32>, vector<48x32xf32>, vector<8x32xf32> -> vector<8x32xf32>
    %6 = arith.addf %2, %5 : vector<8x32xf32>
    %c0_8 = arith.constant 0 : index
    %c0_9 = arith.constant 0 : index
    %7 = vector.load %arg2[%c0_8, %c0_9] : memref<8x64xf32, #tpu.memory_space<vmem>>, vector<8x64xf32>
    %c0_10 = arith.constant 0 : index
    %c0_11 = arith.constant 0 : index
    %8 = vector.load %arg5[%c0_10, %c0_11] : memref<64x32xf32, #tpu.memory_space<vmem>>, vector<64x32xf32>
    %cst_12 = arith.constant dense<0.000000e+00> : vector<8x32xf32>
    %9 = tpu.matmul %7, %8, %cst_12 {dimension_numbers = #tpu.dot_dimension_numbers<[1], [0], [0], [1], [0, 0, 1, 1], [], []>} : vector<8x64xf32>, vector<64x32xf32>, vector<8x32xf32> -> vector<8x32xf32>
    %10 = arith.addf %6, %9 : vector<8x32xf32>
    %c0_13 = arith.constant 0 : index
    %c0_14 = arith.constant 0 : index
    %11 = vector.load %arg6[%c0_13, %c0_14] : memref<1x32xf32, #tpu.memory_space<vmem>>, vector<1x32xf32>
    %12 = vector.broadcast %11 : vector<1x32xf32> to vector<8x32xf32>
    %13 = arith.addf %10, %12 : vector<8x32xf32>
    %c0_15 = arith.constant 0 : index
    %c0_16 = arith.constant 0 : index
    %14 = vector.load %arg7[%c0_15, %c0_16] : memref<8x32xf32, #tpu.memory_space<vmem>>, vector<8x32xf32>
    tpu.vector_store %arg7[%c0_15, %c0_16], %13 {strides = array<i32>} : memref<8x32xf32, #tpu.memory_space<vmem>>, vector<8x32xf32>,
    return
  }
}

</mosaic_0001>

<bundles_post_ra>
// kernel: tpu_custom_call.1
= control target key start
LH: loop header
LB: loop body
LE: loop exit
PB: predicated region body
PF: predicated region fallthrough
CT: control target
= control target key end

     0   :  { %v419_v3 = vmov 0.0|0.0   ;;  %vm420_vm0 = vmmov 0   ;;  %v421_v10 = vmov 0.0   ;;  %s546_s0 = inlined_call_operand.vmem [shape: f32[8,32], index: 0, kind: input, shape index: {}]   ;;  %s547_s1 = inlined_call_operand.vmem [shape: f32[8,48], index: 1, kind: input, shape index: {}]   ;;  %s548_s2 = inlined_call_operand.vmem [shape: f32[8,64], index: 2, kind: input, shape index: {}]   ;;  %s549_s3 = inlined_call_operand.vmem [shape: f32[32,32], index: 3, kind: input, shape index: {}]   ;;  %s550_s4 = inlined_call_operand.vmem [shape: f32[48,32], index: 4, kind: input, shape index: {}]   ;;  %s551_s5 = inlined_call_operand.vmem [shape: f32[64,32], index: 5, kind: input, shape index: {}]   ;;  %s552_s6 = inlined_call_operand.vmem [shape: f32[1,32], index: 6, kind: input, shape index: {}]   ;;  %s553_s7 = inlined_call_operand.hbm [shape: f32[8,32], index: 7, kind: output, shape index: {}]  }
   0x1   :  { %v33_v0 = vld [vmem:[%s550_s4] sm:$0xff]  ;;  %v34_v1 = vld [vmem:[%s550_s4 + $0x8] sm:$0xff]  ;;  %v35_v2 = vld [vmem:[%s550_s4 + $0x10] sm:$0xff]  ;;  %364 = vmatprep.subr.bf16.mxu0 %v419_v3  ;;  %379 = vmatprep.subr.bf16.mxu1 %v419_v3 }
   0x2   :  { %v365_v4 = vpack.c.bf16 %v34_v1, %v33_v0  ;;  %v36_v5 = vld [vmem:[%s550_s4 + $0x18] sm:$0xff]  ;;  %v188_v6 = vld [vmem:[%s551_s5] sm:$0xff]  ;;  %v189_v7 = vld [vmem:[%s551_s5 + $0x8] sm:$0xff]  ;;  %331 = vmatprep.mubr.msk.f32.mxu0 %vm420_vm0, %v421_v10  ;;  %361 = vmatprep.mubr.msk.f32.mxu1 %vm420_vm0, %v421_v10 }
   0x3   :  { %v380_v8 = vpack.c.bf16 %v189_v7, %v188_v6  ;;  %v190_v9 = vld [vmem:[%s551_s5 + $0x10] sm:$0xff]  ;;  %v368_v11 = vpack.c.bf16 %v36_v5, %v35_v2  ;;  %v191_v12 = vld [vmem:[%s551_s5 + $0x18] sm:$0xff]  ;;  %v37_v13 = vld [vmem:[%s550_s4 + $0x20] sm:$0xff] }
   0x4   :  { %366 = vmatpush3.bf16.msra.mxu0 %v365_v4  ;;  %v38_v14 = vld [vmem:[%s550_s4 + $0x28] sm:$0xff]  ;;  %v383_v15 = vpack.c.bf16 %v191_v12, %v190_v9  ;;  %v192_v16 = vld [vmem:[%s551_s5 + $0x20] sm:$0xff] }
   0x5   :  { %367 = vmatprep.subr.bf16.mxu0 %v419_v3  ;;  %381 = vmatpush3.bf16.msra.mxu1 %v380_v8  ;;  %v193_v17 = vld [vmem:[%s551_s5 + $0x28] sm:$0xff]  ;;  %v371_v18 = vpack.c.bf16 %v38_v14, %v37_v13 }
   0x6   :  { %382 = vmatprep.subr.bf16.mxu1 %v419_v3 }
   0x8   :  { %369 = vmatpush3.bf16.msra.mxu0 %v368_v11 }
   0x9   :  { %12 = vsyncpa [#allocation3], 0  ;;  %370 = vmatprep.subr.bf16.mxu0 %v419_v3  ;;  %384 = vmatpush3.bf16.msra.mxu1 %v383_v15  ;;  %v28_v19 = vld [vmem:[%s549_s3] sm:$0xff]  ;;  %v29_v20 = vld [vmem:[%s549_s3 + $0x8] sm:$0xff]  ;;  %v386_v21 = vpack.c.bf16 %v193_v17, %v192_v16  ;;  %vm39_vm1 = vcmask 392192   ;;  %vm196_vm2 = vcmask 523264  }
   0xa   :  { %385 = vmatprep.subr.bf16.mxu1 %v419_v3  ;;  %v194_v22 = vld [vmem:[%s551_s5 + $0x30] sm:$0xff]  ;;  %v195_v23 = vld [vmem:[%s551_s5 + $0x38] sm:$0xff]  ;;  %v32_v24 = vld [vmem:[%s547_s1] sm:$0xff]  ;;  %v374_v25 = vpack.c.bf16 %v29_v20, %v28_v19  ;;  %vm113_vm3 = vcmask 261120  }
   0xb   :  { %v30_v26 = vld [vmem:[%s549_s3 + $0x10] sm:$0xff]  ;;  %v31_v27 = vld [vmem:[%s549_s3 + $0x18] sm:$0xff]  ;;  %v389_v28 = vpack.c.bf16 %v195_v23, %v194_v22  ;;  %v187_v30 = vld [vmem:[%s548_s2] sm:$0xff]  ;;  %s422_s2 = smov [#allocation2]  }
   0xc   :  { %372 = vmatpush3.bf16.msra.mxu0 %v371_v18  ;;  %v377_v29 = vpack.c.bf16 %v31_v27, %v30_v26  ;;  %v27_v31 = vld [vmem:[%s546_s0] sm:$0xff]  ;;  %s286_s18 = sshll.u32 %s422_s2, 4  ;;  %s287_s18 = int_to_ptr.vmem [resolvable:$true] %s286_s18 }
   0xd   :  { %373 = vmatprep.subr.bf16.mxu0 %v419_v3  ;;  %387 = vmatpush3.bf16.msra.mxu1 %v386_v21  ;;  %v297_v39 = vld [vmem:[%s552_s6] ss:$0 sm:$0xff]  ;;  %s395_s0 = scalar_lea.vmem %s287_s18, 128  ;;  %p400_p1 = scmp.lt.s32.totalorder %s287_s18, %s287_s18 }
   0xe   :  { %388 = vmatprep.subr.bf16.mxu1 %v419_v3  ;;  %p396_p0 = scmp.ne.s32.totalorder %s287_s18, %s395_s0  ;;  %p401_p2 = scmp.lt.s32.totalorder %s395_s0, %s395_s0 }
   0xf   :  { %332 = vmatmul.mubr.msk.f32.vlgmr.msra.gmra.mrb[0].mxu0 %vm39_vm1, %v32_v24 }
  0x10   :  { %375 = vmatpush3.bf16.msra.mxu0 %v374_v25  ;;  %342 = vmatprep.mubr.msk.f32.mxu0 %vm420_vm0, %v421_v10  ;;  %p402_p3 = por %p401_p2, %p400_p1 }
  0x11   :  { %376 = vmatprep.subr.bf16.mxu0 %v419_v3  ;;  %390 = vmatpush3.bf16.msra.mxu1 %v389_v28 }
  0x12   :  { %p403_p4 = pnand %p402_p3, %p396_p0 }
  0x14   :  { %378 = vmatpush3.bf16.msra.mxu0 %v377_v29  ;;  %362 = vmatmul.mubr.msk.f32.vlgmr.msra.gmra.mrb[0].mxu1 %vm196_vm2, %v187_v30 }
  0x17   :  { %343 = vmatmul.mubr.msk.f32.vlgmr.msra.gmra.mrb[2].mxu0 %vm113_vm3, %v27_v31 }
  0xe2   :  { %v109_v32 = vpop.f32.mrb[0].mxu0 }
  0xe3   :  { %v333_v33 = vpop.f32.mrb[1].mxu0 }
  0xe7   :  { %v266_v34 = vpop.f32.mrb[0].mxu1 }
  0xe8   :  { %v363_v35 = vpop.f32.mrb[1].mxu1 }
  0xea   :  { %v183_v36 = vpop.f32.mrb[2].mxu0 }
  0xeb   :  { %v184_v37 = vadd.f32 %v183_v36, %v109_v32  ;;  %v344_v38 = vpop.f32.mrb[3].mxu0 }
  0xed   :  { %v270_v40 = vadd.f32 %v266_v34, %v184_v37 }
  0xef   :  { %v278_v41 = vadd.f32 %v297_v39, %v270_v40 }
  0xf1   :  { %279 = vst.msk [vmem:[#allocation2] sm:$0xff] %vm113_vm3, %v278_v41 }
  0xf2   :  { %406 = shalt.err (!%p403_p4)
}
  0xf3   :  { %s407_s21 = scalar_lea.hbm %s553_s7, 128 }
  0xf4   :  { %p408_p5 = scmp.ne.s32.totalorder %s553_s7, %s407_s21  ;;  %p411_p6 = scmp.lt.u32.totalorder %s407_s21, %s553_s7 }
  0xf6   :  { %p413_p7 = pnand %p411_p6, %p408_p5 }
  0xf8   :  { %416 = shalt.err (!%p413_p7)
}
  0xf9   :  { %289 = dma.vmem_to_hbm [thread:$0]  %s287_s18, 128, %s553_s7, [#allocation3]  }
  0xfa   :  { %417 = dma.done.wait [#allocation3], 128  }
  0xfb   :  { %418 = vsyncadd [#allocation3], 4294967168 }
  0xfc   :  { %293 = vsyncpa [#allocation3], 1 }

</bundles_post_ra>
